<compile_context>
chip_gen: v7x
topology: tpu7x:2x2x1
jax: 0.10.0
libtpu: 0.0.40
codegen_flags: <defaults>
</compile_context>

<pallas_src>
import functools

import jax
import jax.numpy as jnp
from jax.experimental import pallas as pl
from jax.experimental.pallas import tpu as pltpu

_LANES = 128
_SUBLANES = 8
# Row tile (in rows of the lane-dense f32 slab) per grid step per core.
# 2048 * 128 * 4 B = 1 MiB per input block -> 2 inputs x 2 pipeline buffers
# ~= 4 MiB, comfortably inside v5e's 16 MiB default scoped VMEM (and the
# larger limits on v6e / v7x).
_MAX_ROW_TILE = 2048


def _gps_loss_kernel(p_ref, t_ref, out_ref, *, rem_g):
    """Accumulate per-lane Huber partial sums for one core's row range.

    p_ref / t_ref : (tile_g, 8, 128) f32 slabs (tile_g groups of 8 rows).
    out_ref       : (8, 128) per-core per-lane accumulator; its block index is
                    constant across the reduction axis, so it stays resident.
    rem_g         : static number of valid 8-row groups in the final block.
    """
    i = pl.program_id(1)
    nb = pl.num_programs(1)

    @pl.when(i == 0)
    def _():
        out_ref[...] = jnp.zeros_like(out_ref)

    def partial_sum(p, t):
        d = p - t
        ad = jnp.abs(d)
        # Branch-free Huber, delta = 1.0 (PyTorch default):
        #   |d| <  1: m = |d| -> m * (|d| - 0.5 * m) = 0.5 * d^2
        #   |d| >= 1: m = 1   -> |d| - 0.5
        m = jnp.minimum(ad, 1.0)
        h = m * (ad - 0.5 * m)
        # Reduce over the leading (groups) axis: pure vreg-wise VPU adds, no
        # cross-lane work in the hot loop.
        return jnp.sum(h, axis=0)

    @pl.when(i < nb - 1)
    def _():
        out_ref[...] += partial_sum(p_ref[...], t_ref[...])

    @pl.when(i == nb - 1)
    def _():
        # Final (possibly ragged) block: only the first rem_g groups hold real
        # data; anything past that is out-of-bounds garbage and is never read.
        out_ref[...] += partial_sum(p_ref[:rem_g], t_ref[:rem_g])


def gps_loss(y_pred, y_true, x_bias=0.5, y_bias=0.5):
    """Pallas implementation of GPSLoss.forward.

    y_pred, y_true: (N, C) with C >= 2; only columns 0 and 1 are used.
    Returns a scalar float32.
    """
    p = jnp.asarray(y_pred, jnp.float32)
    t = jnp.asarray(y_true, jnp.float32)
    assert p.ndim == 2 and p.shape[1] >= 2 and p.shape == t.shape
    n = p.shape[0]
    if p.shape[1] > 2:
        # Only columns 0 and 1 participate in the loss; under jit with
        # allow_input_fusion this slice can fuse into the operand fetch.
        p = p[:, :2]
        t = t[:, :2]

    # ---- lane-dense layout --------------------------------------------------
    # Contiguous (N, 2) rows flatten to [x0, y0, x1, y1, ...]; viewed as a
    # (2, groups, 8, 128) slab.  The leading axis of 2 splits the rows across
    # TensorCores; each half stays sublane-aligned (rows multiple of 16).
    total = n * 2
    rows = -(-total // _LANES)
    rows = ((rows + 15) // 16) * 16
    rows_half = rows // 2                       # multiple of 8
    groups_half = rows_half // _SUBLANES        # >= 1
    tile_g = min(_MAX_ROW_TILE // _SUBLANES, groups_half)
    nb = -(-groups_half // tile_g)              # grid steps per core
    rem_g = groups_half - (nb - 1) * tile_g     # valid groups in final block
    padded = rows * _LANES

    p_flat = p.reshape(-1)
    t_flat = t.reshape(-1)
    if padded != total:
        # Zero-pad the tail: diff = 0 -> Huber = 0 -> no contribution.
        p_flat = jnp.pad(p_flat, (0, padded - total))
        t_flat = jnp.pad(t_flat, (0, padded - total))
    p4 = p_flat.reshape(2, groups_half, _SUBLANES, _LANES)
    t4 = t_flat.reshape(2, groups_half, _SUBLANES, _LANES)

    partials = pl.pallas_call(
        functools.partial(_gps_loss_kernel, rem_g=rem_g),
        out_shape=jax.ShapeDtypeStruct((2 * _SUBLANES, _LANES), jnp.float32),
        grid_spec=pltpu.PrefetchScalarGridSpec(
            num_scalar_prefetch=0,
            grid=(2, nb),
            in_specs=[
                pl.BlockSpec((None, tile_g, _SUBLANES, _LANES),
                             lambda c, i: (c, i, 0, 0)),
                pl.BlockSpec((None, tile_g, _SUBLANES, _LANES),
                             lambda c, i: (c, i, 0, 0)),
            ],
            out_specs=pl.BlockSpec((_SUBLANES, _LANES), lambda c, i: (c, 0)),
        ),
        compiler_params=pltpu.CompilerParams(
            # Core-split axis is parallel; the row/reduction axis is arbitrary.
            dimension_semantics=("parallel", "arbitrary"),
            # Let XLA fuse the pad / reshape (and any slice / cast) producers
            # into the kernel operands instead of materializing them in HBM.
            allow_input_fusion=[True, True],
        ),
    )(p4, t4)

    # Per-lane weights: the x/y interleave plus an even lane count (128) means
    # even lanes are x and odd lanes are y.  Bias and 1/N are applied here,
    # once, to the tiny (16, 128) partial-sum output (runtime values -> no
    # recompile when biases change), then everything is reduced to a scalar.
    inv_n = 1.0 / float(n)
    w = jnp.tile(jnp.array([x_bias * inv_n, y_bias * inv_n], jnp.float32),
                 _LANES // 2)
    return jnp.sum(partials * w)


def _reference(y_pred, y_true, x_bias=0.5, y_bias=0.5):
    """Plain-JAX reference (mirrors torch.nn.HuberLoss semantics)."""
    def huber_mean(a, b):
        d = a - b
        ad = jnp.abs(d)
        h = jnp.where(ad < 1.0, 0.5 * d * d, ad - 0.5)
        return jnp.mean(h)

    return (huber_mean(y_pred[:, 0], y_true[:, 0]) * x_bias
            + huber_mean(y_pred[:, 1], y_true[:, 1]) * y_bias)


if __name__ == "__main__":
    key = jax.random.PRNGKey(0)
    k1, k2, k3, k4, k5, k6 = jax.random.split(key, 6)

    loss_fn = jax.jit(gps_loss, static_argnames=("x_bias", "y_bias"))

    # Small GPS-style batch: (batch, 2) = (x, y) coordinates.
    N = 16
    y_pred = jax.random.normal(k1, (N, 2), dtype=jnp.float32) * 2.0
    y_true = jax.random.normal(k2, (N, 2), dtype=jnp.float32) * 2.0
    loss = jax.block_until_ready(loss_fn(y_pred, y_true, x_bias=0.5, y_bias=0.5))
    ref = _reference(y_pred, y_true, 0.5, 0.5)
    assert jnp.allclose(loss, ref, atol=1e-5, rtol=1e-5), (loss, ref)

    # Larger batch: zero-padded tail + non-default biases.
    N2 = 40000
    y_pred2 = jax.random.normal(k3, (N2, 2), dtype=jnp.float32) * 3.0
    y_true2 = jax.random.normal(k4, (N2, 2), dtype=jnp.float32) * 3.0
    loss2 = jax.block_until_ready(loss_fn(y_pred2, y_true2, x_bias=0.3, y_bias=0.7))
    ref2 = _reference(y_pred2, y_true2, 0.3, 0.7)
    assert jnp.allclose(loss2, ref2, atol=1e-4, rtol=1e-4), (loss2, ref2)

    # Even larger batch: exercises multi-block accumulation per core (nb > 1)
    # and the ragged final block path.
    N3 = 300000
    y_pred3 = jax.random.normal(k5, (N3, 2), dtype=jnp.float32) * 3.0
    y_true3 = jax.random.normal(k6, (N3, 2), dtype=jnp.float32) * 3.0
    loss3 = jax.block_until_ready(loss_fn(y_pred3, y_true3, x_bias=0.6, y_bias=0.4))
    ref3 = _reference(y_pred3, y_true3, 0.6, 0.4)
    assert jnp.allclose(loss3, ref3, atol=1e-4, rtol=1e-4), (loss3, ref3)

    print("KERNEL_OK")
</pallas_src>

<mosaic_0001>
module attributes {stable_mosaic.version = 11 : i64} {
  func.func @_gps_loss_kernel(%arg0: i32, %arg1: i32, %arg2: memref<1x1x8x128xf32, #tpu.memory_space<vmem>>, %arg3: memref<1x1x8x128xf32, #tpu.memory_space<vmem>>, %arg4: memref<8x128xf32, #tpu.memory_space<vmem>>) attributes {dimension_semantics = [#tpu.dimension_semantics<parallel>, #tpu.dimension_semantics<arbitrary>], iteration_bounds = array<i64: 2, 1>, scalar_prefetch = 0 : i64, scratch_operands = 0 : i64, tpu.core_type = #tpu.core_type<tc>, window_params = [{transform_indices = @transform_0, window_bounds = array<i64: 1, 1, 8, 128>}, {transform_indices = @transform_1, window_bounds = array<i64: 1, 1, 8, 128>}, {transform_indices = @transform_2, window_bounds = array<i64: 8, 128>}]} {
    %c0_i32 = arith.constant 0 : i32
    %0 = arith.cmpi eq, %arg1, %c0_i32 : i32
    %1 = arith.extui %0 : i1 to i32
    %c0_i32_0 = arith.constant 0 : i32
    %2 = arith.cmpi ne, %1, %c0_i32_0 : i32
    scf.if %2 {
      %cst = arith.constant 0.000000e+00 : f32
      %9 = vector.broadcast %cst : f32 to vector<8x128xf32>
      %c0 = arith.constant 0 : index
      %c0_5 = arith.constant 0 : index
      %10 = vector.load %arg4[%c0, %c0_5] : memref<8x128xf32, #tpu.memory_space<vmem>>, vector<8x128xf32>
      tpu.vector_store %arg4[%c0, %c0_5], %9 {strides = array<i32>} : memref<8x128xf32, #tpu.memory_space<vmem>>, vector<8x128xf32>,
    } else {
    }
    %c0_i32_1 = arith.constant 0 : i32
    %3 = arith.cmpi slt, %arg1, %c0_i32_1 : i32
    %4 = arith.extui %3 : i1 to i32
    %c0_i32_2 = arith.constant 0 : i32
    %5 = arith.cmpi ne, %4, %c0_i32_2 : i32
    scf.if %5 {
      %c0 = arith.constant 0 : index
      %c0_5 = arith.constant 0 : index
      %9 = vector.load %arg4[%c0, %c0_5] : memref<8x128xf32, #tpu.memory_space<vmem>>, vector<8x128xf32>
      %c0_6 = arith.constant 0 : index
      %c0_7 = arith.constant 0 : index
      %c0_8 = arith.constant 0 : index
      %c0_9 = arith.constant 0 : index
      %10 = vector.load %arg2[%c0_6, %c0_7, %c0_8, %c0_9] : memref<1x1x8x128xf32, #tpu.memory_space<vmem>>, vector<1x1x8x128xf32>
      %11 = vector.shape_cast %10 : vector<1x1x8x128xf32> to vector<1x8x128xf32>
      %c0_10 = arith.constant 0 : index
      %c0_11 = arith.constant 0 : index
      %c0_12 = arith.constant 0 : index
      %c0_13 = arith.constant 0 : index
      %12 = vector.load %arg3[%c0_10, %c0_11, %c0_12, %c0_13] : memref<1x1x8x128xf32, #tpu.memory_space<vmem>>, vector<1x1x8x128xf32>
      %13 = vector.shape_cast %12 : vector<1x1x8x128xf32> to vector<1x8x128xf32>
      %14 = arith.subf %11, %13 : vector<1x8x128xf32>
      %15 = math.absf %14 : vector<1x8x128xf32>
      %cst = arith.constant 1.000000e+00 : f32
      %16 = vector.broadcast %cst : f32 to vector<1x8x128xf32>
      %17 = arith.minimumf %15, %16 : vector<1x8x128xf32>
      %cst_14 = arith.constant 5.000000e-01 : f32
      %18 = vector.broadcast %cst_14 : f32 to vector<1x8x128xf32>
      %19 = arith.mulf %18, %17 : vector<1x8x128xf32>
      %20 = arith.subf %15, %19 : vector<1x8x128xf32>
      %21 = arith.mulf %17, %20 : vector<1x8x128xf32>
      %cst_15 = arith.constant dense<0.000000e+00> : vector<8x128xf32>
      %22 = vector.multi_reduction <add>, %21, %cst_15 [0] : vector<1x8x128xf32> to vector<8x128xf32>
      %23 = arith.addf %9, %22 : vector<8x128xf32>
      %c0_16 = arith.constant 0 : index
      %c0_17 = arith.constant 0 : index
      %24 = vector.load %arg4[%c0_16, %c0_17] : memref<8x128xf32, #tpu.memory_space<vmem>>, vector<8x128xf32>
      tpu.vector_store %arg4[%c0_16, %c0_17], %23 {strides = array<i32>} : memref<8x128xf32, #tpu.memory_space<vmem>>, vector<8x128xf32>,
    } else {
    }
    %c0_i32_3 = arith.constant 0 : i32
    %6 = arith.cmpi eq, %arg1, %c0_i32_3 : i32
    %7 = arith.extui %6 : i1 to i32
    %c0_i32_4 = arith.constant 0 : i32
    %8 = arith.cmpi ne, %7, %c0_i32_4 : i32
    scf.if %8 {
      %c0 = arith.constant 0 : index
      %c0_5 = arith.constant 0 : index
      %9 = vector.load %arg4[%c0, %c0_5] : memref<8x128xf32, #tpu.memory_space<vmem>>, vector<8x128xf32>
      %c0_6 = arith.constant 0 : index
      %c0_7 = arith.constant 0 : index
      %c0_8 = arith.constant 0 : index
      %c0_9 = arith.constant 0 : index
      %10 = vector.load %arg2[%c0_6, %c0_7, %c0_8, %c0_9] : memref<1x1x8x128xf32, #tpu.memory_space<vmem>>, vector<1x1x8x128xf32>
      %11 = vector.shape_cast %10 : vector<1x1x8x128xf32> to vector<1x8x128xf32>
      %c0_10 = arith.constant 0 : index
      %c0_11 = arith.constant 0 : index
      %c0_12 = arith.constant 0 : index
      %c0_13 = arith.constant 0 : index
      %12 = vector.load %arg3[%c0_10, %c0_11, %c0_12, %c0_13] : memref<1x1x8x128xf32, #tpu.memory_space<vmem>>, vector<1x1x8x128xf32>
      %13 = vector.shape_cast %12 : vector<1x1x8x128xf32> to vector<1x8x128xf32>
      %14 = arith.subf %11, %13 : vector<1x8x128xf32>
      %15 = math.absf %14 : vector<1x8x128xf32>
      %cst = arith.constant 1.000000e+00 : f32
      %16 = vector.broadcast %cst : f32 to vector<1x8x128xf32>
      %17 = arith.minimumf %15, %16 : vector<1x8x128xf32>
      %cst_14 = arith.constant 5.000000e-01 : f32
      %18 = vector.broadcast %cst_14 : f32 to vector<1x8x128xf32>
      %19 = arith.mulf %18, %17 : vector<1x8x128xf32>
      %20 = arith.subf %15, %19 : vector<1x8x128xf32>
      %21 = arith.mulf %17, %20 : vector<1x8x128xf32>
      %cst_15 = arith.constant dense<0.000000e+00> : vector<8x128xf32>
      %22 = vector.multi_reduction <add>, %21, %cst_15 [0] : vector<1x8x128xf32> to vector<8x128xf32>
      %23 = arith.addf %9, %22 : vector<8x128xf32>
      %c0_16 = arith.constant 0 : index
      %c0_17 = arith.constant 0 : index
      %24 = vector.load %arg4[%c0_16, %c0_17] : memref<8x128xf32, #tpu.memory_space<vmem>>, vector<8x128xf32>
      tpu.vector_store %arg4[%c0_16, %c0_17], %23 {strides = array<i32>} : memref<8x128xf32, #tpu.memory_space<vmem>>, vector<8x128xf32>,
    } else {
    }
    return
  }
  func.func @transform_0(%arg0: i32, %arg1: i32) -> (i32, i32, i32, i32) {
    %c0_i32 = arith.constant 0 : i32
    %c0_i32_0 = arith.constant 0 : i32
    %c0_i32_1 = arith.constant 0 : i32
    return %arg0, %arg1, %c0_i32, %c0_i32_0 : i32, i32, i32, i32
  }
  func.func @transform_1(%arg0: i32, %arg1: i32) -> (i32, i32, i32, i32) {
    %c0_i32 = arith.constant 0 : i32
    %c0_i32_0 = arith.constant 0 : i32
    %c0_i32_1 = arith.constant 0 : i32
    return %arg0, %arg1, %c0_i32, %c0_i32_0 : i32, i32, i32, i32
  }
  func.func @transform_2(%arg0: i32, %arg1: i32) -> (i32, i32) {
    %c0_i32 = arith.constant 0 : i32
    %c0_i32_0 = arith.constant 0 : i32
    return %arg0, %c0_i32 : i32, i32
  }
}

</mosaic_0001>

<bundles_post_ra>
// kernel: gps_loss.2
= control target key start
LH: loop header
LB: loop body
LE: loop exit
PB: predicated region body
PF: predicated region fallthrough
CT: control target
= control target key end

     0   :  { %s479_s14 = smov 0   ;;  %s481_s15 = smov 0   ;;  %s523_s0 = inlined_call_operand.vmem [shape: f32[32], index: 0, kind: input, shape index: {}]   ;;  %s524_s1 = inlined_call_operand.<no memory space> [shape: f32[], index: 1, kind: input, shape index: {}]   ;;  %s525_s2 = inlined_call_operand.vmem [shape: f32[32], index: 2, kind: input, shape index: {}]   ;;  %s526_s3 = inlined_call_operand.vmem [shape: f32[16,128], index: 3, kind: output, shape index: {}]  }
   0x1   :  { %v8_v0 = vstv %s524_s1  ;;  %s483_s16 = smov 0  }
   0x2 LB: > { %s27_s1 = sadd.s32 1, %s449_s15  ;;  %p396_p0 = scmp.ge.s32.totalorder %s453_s16, 1  ;;  %s453_s16 = sphi %s483_s16, %s15_s16   ;;  %s449_s15 = sphi %s481_s15, %s528_s15   ;;  %s445_s14 = sphi %s479_s14, %s527_s14  }
   0x3   : > { %p29_p1 = scmp.ge.s32.totalorder %s27_s1, 2  ;;  %p149_p2 = scmp.lt.s32.totalorder %s453_s16, 3 }
   0x5   : > { %s530_s1 = smov (%p29_p1, %s27_s1), 0  ;;  %p150_p3 = pnand %p396_p0, %p149_p2 }
   0x6   : > { %p183_p4 = scmp.lt.s32.totalorder (!%p150_p3), %s445_s14, 0  ;;  %p201_p5 = scmp.lt.s32.totalorder (!%p150_p3), %s445_s14, 1  ;;  %v455_v1 = vmov (!%p150_p3), 0.0   ;;  %v387_v4 = vlaneseq (!%p150_p3) }
   0x7   : > { %153 = sbr.rel (%p150_p3) target bundleno = 41 (0x29), region = 28  ;;  %s205_s17 = ssub.s32 (!%p150_p3), 0, %s445_s14 }
   0x8   : > { %p206_p6 = scmp.lt.s32.totalorder (!%p150_p3), %s205_s17, 0  ;;  %v383_v3 = vstv (!%p150_p3), %s205_s17  ;;  %s402_s5 = sshll.u32 (!%p150_p3), %s445_s14, 10 }
   0x9   : > { %vm384_vm0 = vcmp.lt.s32.totalorder (!%p150_p3), %v383_v3, 0  ;;  %v388_v5 = vstv (!%p150_p3), %s402_s5 }
   0xa   : > { %v389_v8 = vadd.s32 (!%p150_p3), %v388_v5, %v387_v4 }
   0xc   : > { %vm390_vm1 = vcmp.lt.s32.totalorder (!%p150_p3), %v389_v8, 32 }
   0xe   : > { %s184_s18 = scalar_select %p183_p4, %s445_s14, 0 }
   0xf   : > { %s202_s19 = scalar_select %p201_p5, %s445_s14, 1 }
  0x10   : > { %s185_s22 = scalar_lea.vmem %s525_s2, %s184_s18  ;;  %s196_s25 = scalar_lea.vmem %s523_s0, %s184_s18 }
  0x11   : > { %s397_s26 = sshll.u32 %s202_s19, 3 }
  0x12   : > { %s204_s29 = scalar_lea.vmem %s526_s3, %s397_s26 }
  0x13   : > { %s207_s30 = scalar_select %p206_p6, 0, 255  ;;  %245 = vst [vmem:[%s204_s29] sm:$0xff] %v455_v1 }
  0x15   : > { %s208_s4 = sand.u32 1, %s207_s30 }
  0x16   : > { %v381_v2 = vld [vmem:[%s196_s25] sm:%s208_s4] }
  0x17   : > { %v357_v6 = vld [vmem:[%s185_s22] sm:%s208_s4]  ;;  %v385_v7 = vsel %vm384_vm0, %v8_v0, %v381_v2 }
  0x18   : > { %v361_v9 = vsel %vm384_vm0, %v8_v0, %v357_v6  ;;  %v391_v10 = vsel %vm390_vm1, %v385_v7, %v8_v0 }
  0x19   : > { %v367_v11 = vsel %vm390_vm1, %v361_v9, %v8_v0 }
  0x1a   : > { %v268_v12 = vsub.f32 %v367_v11, %v391_v10  ;;  %v265_v17 = vld [vmem:[%s204_s29] sm:$0xff] }
  0x1c   : > { %v269_v13 = vand.u32 2147483647, %v268_v12 }
  0x1e   : > { %v270_v14 = vmin.f32 %v269_v13, 1.0 }
  0x20   : > { %v271_v15 = vmul.f32 0.5, %v270_v14 }
  0x22   : > { %v272_v16 = vsub.f32 %v269_v13, %v271_v15 }
  0x24   : > { %v273_v18 = vmul.f32 %v272_v16, %v270_v14 }
  0x26   : > { %v275_v19 = vadd.f32 %v273_v18, %v265_v17 }
  0x28   : > { %276 = vst [vmem:[%s204_s29] sm:$0xff] %v275_v19 }
  0x29 PF: > { %s15_s16 = sadd.s32 1, %s453_s16   ;;  %s527_s14 = smov %s449_s15 }
  0x2a   : > { %p12_p7 = scmp.ge.s32.totalorder %s15_s16, 4   ;;  %s528_s15 = smov %s530_s1 }
  0x2c   :  { %14 = sbr.rel (!%p12_p7) target bundleno = 2 (0x2), region = 73 }

</bundles_post_ra>
